<compile_context>
chip_gen: v5e
topology: v5e:2x2
jax: 0.10.0
libtpu: 0.0.40
codegen_flags: <defaults>
</compile_context>

<pallas_src>
import functools
import math

import jax
import jax.numpy as jnp
from jax.experimental import pallas as pl
from jax.experimental.pallas import tpu as pltpu

# Explicit scoped-VMEM budget: kernels below use < 4 MiB per step, but we pin
# the limit well under v7x's 64 MiB physical VMEM (also fine on v5e/v6e).
_VMEM_LIMIT = 48 * 1024 * 1024


# ---------------------------------------------------------------------------
# ALiBi slopes (direct port of _get_alibi_slopes)
# ---------------------------------------------------------------------------
def get_alibi_slopes(total_num_heads: int) -> jnp.ndarray:
    closest_power_of_2 = 2 ** math.floor(math.log2(total_num_heads))
    base = 2 ** (-(2 ** (-(math.log2(closest_power_of_2) - 3))))
    powers = jnp.arange(1, 1 + closest_power_of_2, dtype=jnp.float32)
    slopes = jnp.power(jnp.float32(base), powers)
    if closest_power_of_2 != total_num_heads:
        extra_base = 2 ** (-(2 ** (-(math.log2(2 * closest_power_of_2) - 3))))
        num_remaining = min(closest_power_of_2,
                            total_num_heads - closest_power_of_2)
        extra_powers = jnp.arange(1, 1 + 2 * num_remaining, 2,
                                  dtype=jnp.float32)
        slopes = jnp.concatenate(
            [slopes, jnp.power(jnp.float32(extra_base), extra_powers)], axis=0)
    return slopes.astype(jnp.float32)


def _fit_block(dim: int, preferred: int) -> int:
    b = min(dim, preferred)
    return b if dim % b == 0 else dim   # full dim is always a legal block


# ---------------------------------------------------------------------------
# Kernel 1 & 3: tiled linear (matmul + bias), bf16 MXU inputs, f32 accumulate
# ---------------------------------------------------------------------------
def _linear_kernel(x_ref, w_ref, b_ref, o_ref, acc_ref):
    k = pl.program_id(2)

    @pl.when(k == 0)
    def _init():
        acc_ref[...] = jnp.zeros_like(acc_ref)

    acc_ref[...] += jnp.dot(x_ref[...], w_ref[...],
                            preferred_element_type=jnp.float32)

    @pl.when(k == pl.num_programs(2) - 1)
    def _finalize():
        o_ref[...] = (acc_ref[...] + b_ref[...]).astype(o_ref.dtype)


def linear(x, w, b, out_dtype, *, bm=128, bn=256, bk=512):
    """out = x @ w + b with a real (M, N, K) grid and streamed weight tiles."""
    M, K = x.shape
    Kw, N = w.shape
    assert K == Kw and b.shape == (N,)
    bm, bn, bk = _fit_block(M, bm), _fit_block(N, bn), _fit_block(K, bk)
    grid = (M // bm, N // bn, K // bk)
    return pl.pallas_call(
        _linear_kernel,
        out_shape=jax.ShapeDtypeStruct((M, N), out_dtype),
        grid=grid,
        in_specs=[
            pl.BlockSpec((bm, bk), lambda i, j, k: (i, k)),
            pl.BlockSpec((bk, bn), lambda i, j, k: (k, j)),
            pl.BlockSpec((1, bn), lambda i, j, k: (0, j)),
        ],
        out_specs=pl.BlockSpec((bm, bn), lambda i, j, k: (i, j)),
        scratch_shapes=[pltpu.VMEM((bm, bn), jnp.float32)],
        compiler_params=pltpu.CompilerParams(
            dimension_semantics=("parallel", "parallel", "arbitrary"),
            vmem_limit_bytes=_VMEM_LIMIT),
    )(x, w, b.reshape(1, N))


# ---------------------------------------------------------------------------
# Kernel 2: flash-style causal ALiBi attention, head split fused via BlockSpec
# ---------------------------------------------------------------------------
def _flash_attn_kernel(slopes_ref, q_ref, k_ref, v_ref, bias_ref, o_ref,
                       m_ref, l_ref, acc_ref, *, scale, block_q, block_kv):
    h = pl.program_id(0)
    qi = pl.program_id(1)
    ki = pl.program_id(2)

    @pl.when(ki == 0)
    def _init():
        m_ref[...] = jnp.full_like(m_ref, -jnp.inf)
        l_ref[...] = jnp.zeros_like(l_ref)
        acc_ref[...] = jnp.zeros_like(acc_ref)

    # Skip kv blocks that lie entirely above the causal diagonal.
    @pl.when(ki * block_kv <= qi * block_q + (block_q - 1))
    def _update():
        # q (bq, hd) contracted against k (bkv, hd) on the head dim
        # (no explicit k.T / XLU transpose).
        s = jax.lax.dot_general(
            q_ref[...], k_ref[...],
            dimension_numbers=(((1,), (1,)), ((), ())),
            preferred_element_type=jnp.float32) * scale          # (bq, bkv)

        # ALiBi bias + causal mask.  diff = key_pos - query_pos, built from a
        # VMEM-resident local tile plus a per-step scalar offset (no iotas).
        slope = slopes_ref[h]
        offset = (ki * block_kv - qi * block_q).astype(jnp.float32)
        diff = bias_ref[...] + offset
        s = jnp.where(diff <= 0.0, s + slope * diff, jnp.float32(-1e30))

        m_prev = m_ref[...]
        m_new = jnp.maximum(m_prev, jnp.max(s, axis=-1, keepdims=True))
        alpha = jnp.exp(m_prev - m_new)
        p = jnp.exp(s - m_new)
        l_ref[...] = alpha * l_ref[...] + jnp.sum(p, axis=-1, keepdims=True)
        acc_ref[...] = alpha * acc_ref[...] + jnp.dot(
            p.astype(v_ref.dtype), v_ref[...],
            preferred_element_type=jnp.float32)
        m_ref[...] = m_new

    @pl.when(ki == pl.num_programs(2) - 1)
    def _finalize():
        inv = pl.reciprocal(l_ref[...], approx=True)
        o_ref[...] = (acc_ref[...] * inv).astype(o_ref.dtype)


def alibi_flash_attention(qkv, slopes, scale, num_heads, head_dim,
                          *, block_q=128, block_kv=128):
    """qkv: [T, 3H] (q|k|v sections).  Returns lane-dense [T, H] attn output."""
    T = qkv.shape[0]
    nh, hd = num_heads, head_dim
    assert qkv.shape[1] == 3 * nh * hd
    # Per-head q/k/v column blocks require a 128-aligned head_dim (lane width).
    assert hd % 128 == 0, "head_dim must be a multiple of 128"
    block_q = _fit_block(T, block_q)
    block_kv = _fit_block(T, block_kv)
    assert block_q % 8 == 0 or block_q == T
    assert block_kv % 8 == 0 or block_kv == T
    nq, nkv = T // block_q, T // block_kv

    # Local (key - query) offsets; constant block index => stays VMEM resident.
    local_diff = (jnp.arange(block_kv, dtype=jnp.float32)[None, :]
                  - jnp.arange(block_q, dtype=jnp.float32)[:, None])

    kernel = functools.partial(_flash_attn_kernel, scale=scale,
                               block_q=block_q, block_kv=block_kv)
    return pl.pallas_call(
        kernel,
        out_shape=jax.ShapeDtypeStruct((T, nh * hd), jnp.bfloat16),
        grid=(nh, nq, nkv),
        in_specs=[
            # ALiBi slopes: whole (tiny) array in SMEM -> cheap scalar reads.
            pl.BlockSpec(memory_space=pltpu.MemorySpace.SMEM),
            # q / k / v read straight out of the [T, 3H] qkv slab.
            pl.BlockSpec((block_q, hd), lambda h, qi, ki: (qi, h)),
            pl.BlockSpec((block_kv, hd), lambda h, qi, ki: (ki, nh + h)),
            pl.BlockSpec((block_kv, hd), lambda h, qi, ki: (ki, 2 * nh + h)),
            # constant (block_q, block_kv) bias tile.
            pl.BlockSpec((block_q, block_kv), lambda h, qi, ki: (0, 0)),
        ],
        # Head h writes columns [h*hd, (h+1)*hd) of a lane-dense [T, H] slab.
        out_specs=pl.BlockSpec((block_q, hd), lambda h, qi, ki: (qi, h)),
        scratch_shapes=[
            pltpu.VMEM((block_q, 1), jnp.float32),     # running max
            pltpu.VMEM((block_q, 1), jnp.float32),     # running denom
            pltpu.VMEM((block_q, hd), jnp.float32),    # output accumulator
        ],
        compiler_params=pltpu.CompilerParams(
            dimension_semantics=("parallel", "parallel", "arbitrary"),
            vmem_limit_bytes=_VMEM_LIMIT),
    )(slopes, qkv, qkv, qkv, local_diff)


# ---------------------------------------------------------------------------
# BloomAttention module (synthetic params, tp_world_size == 1)
# ---------------------------------------------------------------------------
class BloomAttentionPallas:

    def __init__(self, hidden_size, n_head, key, *, block_q=128, block_kv=128):
        self.hidden_size = hidden_size
        self.num_heads = n_head
        self.head_dim = hidden_size // n_head
        assert self.head_dim * n_head == hidden_size
        self.scaling = self.head_dim ** (-0.5)
        self.alibi_slopes = get_alibi_slopes(n_head)
        self.block_q = block_q
        self.block_kv = block_kv

        k1, k2, k3, k4 = jax.random.split(key, 4)
        std = 0.02
        # Weights kept in bf16 so the MXU runs at bf16 rate; biases and all
        # accumulation stay f32.
        self.w_qkv = (jax.random.normal(k1, (hidden_size, 3 * hidden_size),
                                        jnp.float32) * std).astype(jnp.bfloat16)
        self.b_qkv = jax.random.normal(k2, (3 * hidden_size,),
                                       jnp.float32) * std
        self.w_dense = (jax.random.normal(k3, (hidden_size, hidden_size),
                                          jnp.float32) * std).astype(jnp.bfloat16)
        self.b_dense = jax.random.normal(k4, (hidden_size,),
                                         jnp.float32) * std

    def __call__(self, position_ids, hidden_states):
        del position_ids
        x = hidden_states.astype(jnp.bfloat16)
        qkv = linear(x, self.w_qkv, self.b_qkv, jnp.bfloat16)        # [T, 3H]
        attn_out = alibi_flash_attention(
            qkv, self.alibi_slopes, self.scaling, self.num_heads,
            self.head_dim, block_q=self.block_q, block_kv=self.block_kv)
        return linear(attn_out, self.w_dense, self.b_dense, jnp.float32)

    # Pure-JAX reference with matching bf16-input / f32-accumulate numerics.
    def reference(self, hidden_states):
        T, H = hidden_states.shape
        nh, hd = self.num_heads, self.head_dim
        x = hidden_states.astype(jnp.bfloat16)
        qkv = (jnp.dot(x, self.w_qkv, preferred_element_type=jnp.float32)
               + self.b_qkv).astype(jnp.bfloat16)
        q, k, v = jnp.split(qkv, 3, axis=-1)
        q = jnp.transpose(q.reshape(T, nh, hd), (1, 0, 2))
        k = jnp.transpose(k.reshape(T, nh, hd), (1, 0, 2))
        v = jnp.transpose(v.reshape(T, nh, hd), (1, 0, 2))
        s = jnp.einsum("hqd,hkd->hqk", q, k,
                       preferred_element_type=jnp.float32) * self.scaling
        row = jnp.arange(T)[:, None]
        col = jnp.arange(T)[None, :]
        alibi = (self.alibi_slopes[:, None, None]
                 * (col - row)[None].astype(jnp.float32))
        s = s + alibi
        s = jnp.where((col <= row)[None], s, jnp.float32(-1e30))
        p = jax.nn.softmax(s, axis=-1)
        o = jnp.einsum("hqk,hkd->hqd", p.astype(jnp.bfloat16), v,
                       preferred_element_type=jnp.float32)
        o = jnp.transpose(o, (1, 0, 2)).reshape(T, H).astype(jnp.bfloat16)
        return (jnp.dot(o, self.w_dense, preferred_element_type=jnp.float32)
                + self.b_dense)


if __name__ == "__main__":
    # Small but tiling-legal shapes: head_dim must be a multiple of 128 so the
    # per-head BlockSpec reads of the [T, 3H] slab obey the (8, 128) rule.
    seq_len = 64
    hidden_size = 256
    n_head = 2
    block_q = 32
    block_kv = 32   # 2x2 q/kv blocks -> exercises online softmax + block skip

    key = jax.random.PRNGKey(0)
    k_param, k_input = jax.random.split(key)

    module = BloomAttentionPallas(hidden_size, n_head, k_param,
                                  block_q=block_q, block_kv=block_kv)
    hidden_states = jax.random.normal(k_input, (seq_len, hidden_size),
                                      jnp.float32)
    position_ids = jnp.arange(seq_len, dtype=jnp.int32)  # unused, as in torch

    out = module(position_ids, hidden_states)
    out = jax.block_until_ready(out)

    ref = module.reference(hidden_states)
    assert out.shape == (seq_len, hidden_size)
    max_err = float(jnp.max(jnp.abs(out - ref)))
    assert jnp.allclose(out, ref, rtol=5e-2, atol=5e-3), max_err

    print("KERNEL_OK")
</pallas_src>

<mosaic_0001>
module attributes {stable_mosaic.version = 11 : i64} {
  func.func @_linear_kernel(%arg0: i32, %arg1: i32, %arg2: i32, %arg3: memref<64x256xbf16, #tpu.memory_space<vmem>>, %arg4: memref<256x256xbf16, #tpu.memory_space<vmem>>, %arg5: memref<1x256xf32, #tpu.memory_space<vmem>>, %arg6: memref<64x256xbf16, #tpu.memory_space<vmem>>, %arg7: memref<64x256xf32, #tpu.memory_space<vmem>>) attributes {dimension_semantics = [#tpu.dimension_semantics<parallel>, #tpu.dimension_semantics<parallel>, #tpu.dimension_semantics<arbitrary>], iteration_bounds = array<i64: 1, 3, 1>, scalar_prefetch = 0 : i64, scratch_operands = 1 : i64, tpu.core_type = #tpu.core_type<tc>, window_params = [{transform_indices = @transform_0, window_bounds = array<i64: 64, 256>}, {transform_indices = @transform_1, window_bounds = array<i64: 256, 256>}, {transform_indices = @transform_2, window_bounds = array<i64: 1, 256>}, {transform_indices = @transform_3, window_bounds = array<i64: 64, 256>}]} {
    %c0_i32 = arith.constant 0 : i32
    %0 = arith.cmpi eq, %arg2, %c0_i32 : i32
    %1 = arith.extui %0 : i1 to i32
    %c0_i32_0 = arith.constant 0 : i32
    %2 = arith.cmpi ne, %1, %c0_i32_0 : i32
    scf.if %2 {
      %cst_10 = arith.constant 0.000000e+00 : f32
      %12 = vector.broadcast %cst_10 : f32 to vector<64x256xf32>
      %c0_11 = arith.constant 0 : index
      %c0_12 = arith.constant 0 : index
      %13 = vector.load %arg7[%c0_11, %c0_12] : memref<64x256xf32, #tpu.memory_space<vmem>>, vector<64x256xf32>
      tpu.vector_store %arg7[%c0_11, %c0_12], %12 {strides = array<i32>} : memref<64x256xf32, #tpu.memory_space<vmem>>, vector<64x256xf32>,
    } else {
    }
    %c0 = arith.constant 0 : index
    %c0_1 = arith.constant 0 : index
    %3 = vector.load %arg7[%c0, %c0_1] : memref<64x256xf32, #tpu.memory_space<vmem>>, vector<64x256xf32>
    %c0_2 = arith.constant 0 : index
    %c0_3 = arith.constant 0 : index
    %4 = vector.load %arg3[%c0_2, %c0_3] : memref<64x256xbf16, #tpu.memory_space<vmem>>, vector<64x256xbf16>
    %c0_4 = arith.constant 0 : index
    %c0_5 = arith.constant 0 : index
    %5 = vector.load %arg4[%c0_4, %c0_5] : memref<256x256xbf16, #tpu.memory_space<vmem>>, vector<256x256xbf16>
    %cst = arith.constant dense<0.000000e+00> : vector<64x256xf32>
    %6 = tpu.matmul %4, %5, %cst {dimension_numbers = #tpu.dot_dimension_numbers<[1], [0], [0], [1], [0, 0, 1, 1], [], []>} : vector<64x256xbf16>, vector<256x256xbf16>, vector<64x256xf32> -> vector<64x256xf32>
    %7 = arith.addf %3, %6 : vector<64x256xf32>
    %c0_6 = arith.constant 0 : index
    %c0_7 = arith.constant 0 : index
    %8 = vector.load %arg7[%c0_6, %c0_7] : memref<64x256xf32, #tpu.memory_space<vmem>>, vector<64x256xf32>
    tpu.vector_store %arg7[%c0_6, %c0_7], %7 {strides = array<i32>} : memref<64x256xf32, #tpu.memory_space<vmem>>, vector<64x256xf32>,
    %c0_i32_8 = arith.constant 0 : i32
    %9 = arith.cmpi eq, %arg2, %c0_i32_8 : i32
    %10 = arith.extui %9 : i1 to i32
    %c0_i32_9 = arith.constant 0 : i32
    %11 = arith.cmpi ne, %10, %c0_i32_9 : i32
    scf.if %11 {
      %c0_10 = arith.constant 0 : index
      %c0_11 = arith.constant 0 : index
      %12 = vector.load %arg7[%c0_10, %c0_11] : memref<64x256xf32, #tpu.memory_space<vmem>>, vector<64x256xf32>
      %c0_12 = arith.constant 0 : index
      %c0_13 = arith.constant 0 : index
      %13 = vector.load %arg5[%c0_12, %c0_13] : memref<1x256xf32, #tpu.memory_space<vmem>>, vector<1x256xf32>
      %14 = vector.broadcast %13 : vector<1x256xf32> to vector<64x256xf32>
      %15 = arith.addf %12, %14 : vector<64x256xf32>
      %16 = arith.truncf %15 : vector<64x256xf32> to vector<64x256xbf16>
      %c0_14 = arith.constant 0 : index
      %c0_15 = arith.constant 0 : index
      %17 = vector.load %arg6[%c0_14, %c0_15] : memref<64x256xbf16, #tpu.memory_space<vmem>>, vector<64x256xbf16>
      tpu.vector_store %arg6[%c0_14, %c0_15], %16 {strides = array<i32>} : memref<64x256xbf16, #tpu.memory_space<vmem>>, vector<64x256xbf16>,
    } else {
    }
    return
  }
  func.func @transform_0(%arg0: i32, %arg1: i32, %arg2: i32) -> (i32, i32) {
    %c0_i32 = arith.constant 0 : i32
    return %arg0, %arg2 : i32, i32
  }
  func.func @transform_1(%arg0: i32, %arg1: i32, %arg2: i32) -> (i32, i32) {
    %c0_i32 = arith.constant 0 : i32
    return %arg2, %arg1 : i32, i32
  }
  func.func @transform_2(%arg0: i32, %arg1: i32, %arg2: i32) -> (i32, i32) {
    %c0_i32 = arith.constant 0 : i32
    %c0_i32_0 = arith.constant 0 : i32
    return %c0_i32, %arg1 : i32, i32
  }
  func.func @transform_3(%arg0: i32, %arg1: i32, %arg2: i32) -> (i32, i32) {
    %c0_i32 = arith.constant 0 : i32
    return %arg0, %arg1 : i32, i32
  }
}

</mosaic_0001>

<bundles_post_ra>
// kernel: tpu_custom_call.1
= control target key start
LH: loop header
LB: loop body
LE: loop exit
PB: predicated region body
PF: predicated region fallthrough
CT: control target
= control target key end

     0   :  { %s1700_s0 = inlined_call_operand.hbm [shape: bf16[64,256], index: 0, kind: input, shape index: {}]   ;;  %s1701_s1 = inlined_call_operand.hbm [shape: bf16[256,768], index: 1, kind: input, shape index: {}]   ;;  %s1702_s2 = inlined_call_operand.hbm [shape: f32[1,768], index: 2, kind: input, shape index: {}]   ;;  %s1703_s3 = inlined_call_operand.hbm [shape: bf16[64,768], index: 3, kind: output, shape index: {}]  }
   0x1   :  { %1706 = sst [smem:[#allocation13_spill]] %s1700_s0 }
   0x2   :  { %1707 = sst [smem:[#allocation14_spill]] %s1701_s1 }
   0x3   :  { %8 = vsyncpa [#allocation4], 0 }
   0x4   :  { %9 = vsyncpa [#allocation7], 0 }
   0x5   :  { %11 = vsyncpa [#allocation7 + $0x1], 0 }
   0x6   :  { %12 = vsyncpa [#allocation5], 0 }
   0x7   :  { %14 = vsyncpa [#allocation5 + $0x1], 0  ;;  %s1428_s12 = smov 0   ;;  %s1430_s13 = smov 0  }
   0x8   :  { %s1432_s14 = smov 0   ;;  %s1434_s15 = smov 0  }
   0x9   :  { %s1436_s16 = smov 0   ;;  %s1438_s17 = smov 0  }
   0xa LB: > { %s35_s18 = sadd.s32 1, %s1395_s16  ;;  %s76_s19 = sadd.s32 1, %s1387_s14  ;;  %s1399_s17 = sphi %s1438_s17, %s20_s17   ;;  %s1395_s16 = sphi %s1436_s16, %s1722_s16   ;;  %s1391_s15 = sphi %s1434_s15, %s1721_s15   ;;  %s1387_s14 = sphi %s1432_s14, %s1720_s14   ;;  %s1383_s13 = sphi %s1430_s13, %s1719_s13   ;;  %s1379_s12 = sphi %s1428_s12, %s1718_s12  }
   0xb   : > { %p37_p0 = scmp.ge.s32.totalorder %s35_s18, 3  ;;  %p83_p1 = scmp.ne.s32.totalorder %s1387_s14, %s1383_s13 }
   0xc   : > { %p84_p2 = scmp.eq.s32.totalorder %s1399_s17, 0  ;;  %p1165_p5 = scmp.lt.s32.totalorder %s1399_s17, 3 }
   0xd   : > { %s1724_s18 = smov (%p37_p0, %s35_s18), 0  ;;  %s187_s22 = sand.u32 1, %s1399_s17  }
   0xe   : > { %p1468_p3 = por %p84_p2, %p83_p1  ;;  %s72_s21 = ssub.s32 %s1395_s16, %s1724_s18 }
   0xf   : > { %p74_p4 = scmp.eq.s32.totalorder %s72_s21, 0  ;;  %s189_s23 = sand.u32 1, %s1387_s14  }
  0x10   : > { %s922_s25 = sshll.u32 %s189_s23, 8  ;;  %s1097_s26 = sshll.u32 %s1395_s16, 3 }
  0x11   : > { %s1478_s24 = scalar_select %p74_p4, %s1387_s14, %s76_s19  }
  0x12   : > { %s1709_s1 = sld [smem:[#allocation14_spill]]  ;;  %s191_s30 = scalar_lea.vmem [#allocation6], %s922_s25 }
  0x13   : > { %s202_s4 = sshll.u32 %s191_s30, 4  ;;  %p1488_p6 = pnand %p1165_p5, %p1468_p3  ;;  %s203_s4 = int_to_ptr.vmem [resolvable:$true] %s202_s4 }
  0x14   : > { %s1492_s7 = scalar_lea.sflag [#allocation7], %s187_s22  ;;  %s1401_s8 = smov 384  }
  0x15   : > { %s1704_s9 = smov 128   ;;  %s1705_s10 = smov 8  }
  0x16   : > { %s1500_s11 = sadd.s32 4294967295, %s1399_s17   ;;  %s918_s19 = sadd.s32 4294967294, %s1399_s17  }
  0x17   : > { %p89_p7 = scmp.ne.s32.totalorder %s1383_s13, %s1379_s12  ;;  %p90_p8 = scmp.eq.s32.totalorder %s1500_s11, 0 }
  0x18   : > { %s199_s29 = scalar_lea.hbm %s1709_s1, %s1097_s26  ;;  %p141_p9 = scmp.eq.s32.totalorder %s1500_s11, 2 }
  0x19   : > { %s200_s5 = sshll.u32 %s199_s29, 4  ;;  %p147_p10 = scmp.eq.s32.totalorder %s918_s19, 2  ;;  %s201_s5 = int_to_ptr.hbm [resolvable:$true] %s200_s5 }
  0x1a   : > { %1156 = dma.hbm_to_vmem [thread:$0]  (!%p1488_p6), %s201_s5, 4096, %s203_s4, %s1492_s7, %s1401_s8, %s1704_s9, %s1705_s10  }
  0x1b   : > { %p1509_p11 = por %p90_p8, %p89_p7  ;;  %p919_p12 = scmp.ge.s32.totalorder %s1399_s17, 1 }
  0x1c   : > { %p1517_p13 = por %p141_p9, %p83_p1  ;;  %p1521_p0 = por %p147_p10, %p89_p7 }
  0x1d   : > { %p154_p2 = scmp.lt.s32.totalorder %s1399_s17, 4  ;;  %s1714_s0 = sld [smem:[#allocation13_spill]] }
  0x1e   : > { %s1404_s29 = smov [#allocation3]   ;;  %s925_s4 = sshll.u32 %s189_s23, 1 }
  0x1f   : > { %p1529_p3 = pnand %p919_p12, %p154_p2  ;;  %s173_s30 = sshll.u32 %s1404_s29, 4  ;;  %s174_s30 = int_to_ptr.vmem [resolvable:$true] %s173_s30 }
  0x20   : > { %s926_s5 = sshll.u32 %s1395_s16, 1  ;;  %s216_s9 = scalar_lea.vmem [#allocation8], %s925_s4 }
  0x21   : > { %p1149_p1 = pneg %p1529_p3  ;;  %s220_s25 = scalar_lea.hbm %s1702_s2, %s926_s5 }
  0x22   : > { %s222_s26 = sshll.u32 %s220_s25, 4  ;;  %s224_s10 = sshll.u32 %s216_s9, 4  ;;  %s223_s26 = int_to_ptr.hbm [resolvable:$true] %s222_s26  ;;  %s225_s10 = int_to_ptr.vmem [resolvable:$true] %s224_s10 }
  0x23   : > { %s171_s27 = sshll.u32 %s1714_s0, 4  ;;  %p1150_p4 = pnand %p1149_p1, %p90_p8  ;;  %s172_s27 = int_to_ptr.hbm [resolvable:$true] %s171_s27 }
  0x24   : > { %s1716_s0 = smov 8   ;;  %s1717_s1 = smov 128  }
  0x25   : > { %1152 = dma.hbm_to_vmem [thread:$0]  (!%p1150_p4), %s172_s27, 1024, %s174_s30, [#allocation4], %s1717_s1, %s1717_s1, %s1716_s0  }
  0x26   : > { %1159 = dma.hbm_to_vmem [thread:$0]  (!%p1488_p6), %s223_s26, 32, %s225_s10, %s1492_s7  }
  0x27   : > { %233 = sbr.rel (%p1529_p3) target bundleno = 285 (0x11d), region = 32 }
  0x2c   : > { %1366 = dma.done.wait (%p90_p8), [#allocation4], 1024  }
  0x2d   : > { %1368 = vsyncadd (%p90_p8), [#allocation4], 4294966272  ;;  %s240_s23 = sand.u32 1, %s1500_s11   ;;  %s1557_s9 = sand.u32 1, %s1383_s13  }
  0x2e   : > { %s929_s0 = sshll.u32 %s1557_s9, 8  ;;  %s241_s1 = scalar_lea.sflag [#allocation7], %s240_s23 }
  0x2f   : > { %s1560_s6 = scalar_lea.vmem [#allocation6], %s929_s0 }
  0x30   : > { %1370 = dma.done.wait (%p1509_p11), %s241_s1, 4128  }
  0x31   : > { %1372 = vsyncadd (%p1509_p11), %s241_s1, 4294963168  ;;  %v1022_v0 = vld [vmem:[%s1560_s6 + $0x70] sm:$0xf]  ;;  %v1121_v1 = vld [vmem:[%s1560_s6 + $0x74] sm:$0xf0]  ;;  %s930_s7 = sshll.u32 %s1557_s9, 1 }
  0x32   : > { %v1086_v2 = vld [vmem:[%s1560_s6 + $0xf0] sm:$0xf]  ;;  %v1023_v3 = vor.u32 %v1121_v1, %v1022_v0  ;;  %v1137_v4 = vld [vmem:[%s1560_s6 + $0xf4] sm:$0xf0]  ;;  %v1120_v5 = vld [vmem:[%s1560_s6 + $0x74] sm:$0xf] }
  0x33   : > { %v1024_v6 = vld [vmem:[%s1560_s6 + $0x78] sm:$0xf0]  ;;  %v1087_v7 = vor.u32 %v1137_v4, %v1086_v2  ;;  %v1136_v9 = vld [vmem:[%s1560_s6 + $0xf4] sm:$0xf]  ;;  %v1014_v11 = vld [vmem:[%s1560_s6 + $0x60] sm:$0xf] }
  0x34   : > { %v1027_v8 = vor.u32 %v1120_v5, %v1024_v6  ;;  %v1088_v10 = vld [vmem:[%s1560_s6 + $0xf8] sm:$0xf0]  ;;  %566 = vmatpush.bf16.msra.mxu0 %v1023_v3  ;;  %v1119_v13 = vld [vmem:[%s1560_s6 + $0x64] sm:$0xf0]  ;;  %v1078_v14 = vld [vmem:[%s1560_s6 + $0xe0] sm:$0xf] }
  0x35   : > { %v1091_v12 = vor.u32 %v1136_v9, %v1088_v10  ;;  %v1135_v15 = vld [vmem:[%s1560_s6 + $0xe4] sm:$0xf0]  ;;  %595 = vmatpush.bf16.msra.mxu1 %v1087_v7  ;;  %v1015_v16 = vor.u32 %v1119_v13, %v1014_v11  ;;  %v1118_v18 = vld [vmem:[%s1560_s6 + $0x64] sm:$0xf]  ;;  %v1016_v19 = vld [vmem:[%s1560_s6 + $0x68] sm:$0xf0] }
  0x36   : > { %624 = vmatpush.bf16.msra.mxu2 %v1027_v8  ;;  %v1079_v17 = vor.u32 %v1135_v15, %v1078_v14  ;;  %v1134_v20 = vld [vmem:[%s1560_s6 + $0xe4] sm:$0xf]  ;;  %v1019_v21 = vor.u32 %v1118_v18, %v1016_v19  ;;  %v1080_v22 = vld [vmem:[%s1560_s6 + $0xe8] sm:$0xf0]  ;;  %v1006_v23 = vld [vmem:[%s1560_s6 + $0x50] sm:$0xf] }
  0x37   : > { %653 = vmatpush.bf16.msra.mxu3 %v1091_v12  ;;  %v1117_v24 = vld [vmem:[%s1560_s6 + $0x54] sm:$0xf0]  ;;  %v1083_v25 = vor.u32 %v1134_v20, %v1080_v22  ;;  %v1070_v26 = vld [vmem:[%s1560_s6 + $0xd0] sm:$0xf]  ;;  %v1116_v28 = vld [vmem:[%s1560_s6 + $0x54] sm:$0xf] }
  0x38   : > { %v1133_v27 = vld [vmem:[%s1560_s6 + $0xd4] sm:$0xf0]  ;;  %567 = vmatpush.bf16.msra.mxu0 %v1015_v16  ;;  %v1007_v29 = vor.u32 %v1117_v24, %v1006_v23  ;;  %v1008_v30 = vld [vmem:[%s1560_s6 + $0x58] sm:$0xf0]  ;;  %v1132_v31 = vld [vmem:[%s1560_s6 + $0xd4] sm:$0xf] }
  0x39   : > { %v1072_v32 = vld [vmem:[%s1560_s6 + $0xd8] sm:$0xf0]  ;;  %596 = vmatpush.bf16.msra.mxu1 %v1079_v17  ;;  %v1071_v33 = vor.u32 %v1133_v27, %v1070_v26  ;;  %v1011_v34 = vor.u32 %v1116_v28, %v1008_v30  ;;  %v998_v35 = vld [vmem:[%s1560_s6 + $0x40] sm:$0xf]  ;;  %v1115_v36 = vld [vmem:[%s1560_s6 + $0x44] sm:$0xf0] }
  0x3a   : > { %625 = vmatpush.bf16.msra.mxu2 %v1019_v21  ;;  %v1062_v37 = vld [vmem:[%s1560_s6 + $0xc0] sm:$0xf]  ;;  %v1075_v38 = vor.u32 %v1132_v31, %v1072_v32  ;;  %v1131_v39 = vld [vmem:[%s1560_s6 + $0xc4] sm:$0xf0]  ;;  %v1114_v40 = vld [vmem:[%s1560_s6 + $0x44] sm:$0xf]  ;;  %v999_v44 = vor.u32 %v1115_v36, %v998_v35 }
  0x3b   : > { %654 = vmatpush.bf16.msra.mxu3 %v1083_v25  ;;  %v1000_v41 = vld [vmem:[%s1560_s6 + $0x48] sm:$0xf0]  ;;  %v1130_v42 = vld [vmem:[%s1560_s6 + $0xc4] sm:$0xf]  ;;  %v1063_v45 = vor.u32 %v1131_v39, %v1062_v37  ;;  %v990_v47 = vld [vmem:[%s1560_s6 + $0x30] sm:$0xf] }
  0x3c   : > { %v1064_v43 = vld [vmem:[%s1560_s6 + $0xc8] sm:$0xf0]  ;;  %568 = vmatpush.bf16.msra.mxu0 %v1007_v29  ;;  %v1003_v46 = vor.u32 %v1114_v40, %v1000_v41  ;;  %v1113_v48 = vld [vmem:[%s1560_s6 + $0x34] sm:$0xf0]  ;;  %v1054_v49 = vld [vmem:[%s1560_s6 + $0xb0] sm:$0xf] }
  0x3d   : > { %597 = vmatpush.bf16.msra.mxu1 %v1071_v33  ;;  %v1067_v50 = vor.u32 %v1130_v42, %v1064_v43  ;;  %v1129_v51 = vld [vmem:[%s1560_s6 + $0xb4] sm:$0xf0]  ;;  %v1112_v52 = vld [vmem:[%s1560_s6 + $0x34] sm:$0xf]  ;;  %v992_v53 = vld [vmem:[%s1560_s6 + $0x38] sm:$0xf0]  ;;  %v991_v56 = vor.u32 %v1113_v48, %v990_v47 }
  0x3e   : > { %626 = vmatpush.bf16.msra.mxu2 %v1011_v34  ;;  %v1128_v54 = vld [vmem:[%s1560_s6 + $0xb4] sm:$0xf]  ;;  %v1056_v55 = vld [vmem:[%s1560_s6 + $0xb8] sm:$0xf0]  ;;  %v1055_v57 = vor.u32 %v1129_v51, %v1054_v49  ;;  %v995_v58 = vor.u32 %v1112_v52, %v992_v53  ;;  %v982_v59 = vld [vmem:[%s1560_s6 + $0x20] sm:$0xf] }
  0x3f   : > { %655 = vmatpush.bf16.msra.mxu3 %v1075_v38  ;;  %v1111_v60 = vld [vmem:[%s1560_s6 + $0x24] sm:$0xf0]  ;;  %v1046_v61 = vld [vmem:[%s1560_s6 + $0xa0] sm:$0xf]  ;;  %v1059_v62 = vor.u32 %v1128_v54, %v1056_v55  ;;  %v1110_v0 = vld [vmem:[%s1560_s6 + $0x24] sm:$0xf] }
  0x40   : > { %569 = vmatpush.bf16.msra.mxu0 %v999_v44  ;;  %v1127_v63 = vld [vmem:[%s1560_s6 + $0xa4] sm:$0xf0]  ;;  %v984_v1 = vld [vmem:[%s1560_s6 + $0x28] sm:$0xf0]  ;;  %v1126_v2 = vld [vmem:[%s1560_s6 + $0xa4] sm:$0xf]  ;;  %v983_v4 = vor.u32 %v1111_v60, %v982_v59 }
  0x41   : > { %598 = vmatpush.bf16.msra.mxu1 %v1063_v45  ;;  %v1048_v3 = vld [vmem:[%s1560_s6 + $0xa8] sm:$0xf0]  ;;  %v1047_v5 = vor.u32 %v1127_v63, %v1046_v61  ;;  %v987_v6 = vor.u32 %v1110_v0, %v984_v1  ;;  %v974_v7 = vld [vmem:[%s1560_s6 + $0x10] sm:$0xf]  ;;  %v1109_v8 = vld [vmem:[%s1560_s6 + $0x14] sm:$0xf0] }
  0x42   : > { %627 = vmatpush.bf16.msra.mxu2 %v1003_v46  ;;  %v1038_v9 = vld [vmem:[%s1560_s6 + $0x90] sm:$0xf]  ;;  %v1051_v10 = vor.u32 %v1126_v2, %v1048_v3  ;;  %v1125_v11 = vld [vmem:[%s1560_s6 + $0x94] sm:$0xf0]  ;;  %v1108_v12 = vld [vmem:[%s1560_s6 + $0x14] sm:$0xf]  ;;  %v975_v16 = vor.u32 %v1109_v8, %v974_v7 }
  0x43   : > { %656 = vmatpush.bf16.msra.mxu3 %v1067_v50  ;;  %v976_v13 = vld [vmem:[%s1560_s6 + $0x18] sm:$0xf0]  ;;  %v1124_v14 = vld [vmem:[%s1560_s6 + $0x94] sm:$0xf]  ;;  %v1039_v17 = vor.u32 %v1125_v11, %v1038_v9  ;;  %v966_v19 = vld [vmem:[%s1560_s6] sm:$0xf] }
  0x44   : > { %570 = vmatpush.bf16.msra.mxu0 %v991_v56  ;;  %v1040_v15 = vld [vmem:[%s1560_s6 + $0x98] sm:$0xf0]  ;;  %v979_v18 = vor.u32 %v1108_v12, %v976_v13  ;;  %v1107_v20 = vld [vmem:[%s1560_s6 + $0x4] sm:$0xf0]  ;;  %v1030_v21 = vld [vmem:[%s1560_s6 + $0x80] sm:$0xf] }
  0x45   : > { %599 = vmatpush.bf16.msra.mxu1 %v1055_v57  ;;  %v1043_v22 = vor.u32 %v1124_v14, %v1040_v15  ;;  %v1123_v23 = vld [vmem:[%s1560_s6 + $0x84] sm:$0xf0]  ;;  %v1106_v24 = vld [vmem:[%s1560_s6 + $0x4] sm:$0xf]  ;;  %v968_v25 = vld [vmem:[%s1560_s6 + $0x8] sm:$0xf0]  ;;  %v967_v28 = vor.u32 %v1107_v20, %v966_v19 }
  0x46   : > { %628 = vmatpush.bf16.msra.mxu2 %v995_v58  ;;  %v1122_v26 = vld [vmem:[%s1560_s6 + $0x84] sm:$0xf]  ;;  %v1032_v27 = vld [vmem:[%s1560_s6 + $0x88] sm:$0xf0]  ;;  %v934_v29 = vld [vmem:[#allocation3] sm:$0xf]  ;;  %v1031_v31 = vor.u32 %v1123_v23, %v1030_v21  ;;  %v971_v32 = vor.u32 %v1106_v24, %v968_v25 }
  0x47   : > { %657 = vmatpush.bf16.msra.mxu3 %v1059_v62  ;;  %v1099_v30 = vld [vmem:[#allocation3 + $0x4] sm:$0xf0]  ;;  %v1098_v33 = vld [vmem:[#allocation3 + $0x4] sm:$0xf]  ;;  %v936_v34 = vld [vmem:[#allocation3 + $0x8] sm:$0xf0]  ;;  %v1035_v35 = vor.u32 %v1122_v26, %v1032_v27 }
  0x48   : > { %571 = vmatpush.bf16.msra.mxu0 %v983_v4  ;;  %v935_v36 = vor.u32 %v1099_v30, %v934_v29  ;;  %v939_v37 = vor.u32 %v1098_v33, %v936_v34  ;;  %v942_v38 = vld [vmem:[#allocation3 + $0x10] sm:$0xf]  ;;  %v1101_v39 = vld [vmem:[#allocation3 + $0x14] sm:$0xf0]  ;;  %v1100_v40 = vld [vmem:[#allocation3 + $0x14] sm:$0xf] }
  0x49   : > { %600 = vmatpush.bf16.msra.mxu1 %v1047_v5  ;;  %v944_v41 = vld [vmem:[#allocation3 + $0x18] sm:$0xf0]  ;;  %v943_v42 = vor.u32 %v1101_v39, %v942_v38  ;;  %v950_v44 = vld [vmem:[#allocation3 + $0x20] sm:$0xf]  ;;  %v1103_v45 = vld [vmem:[#allocation3 + $0x24] sm:$0xf0] }
  0x4a   : > { %629 = vmatpush.bf16.msra.mxu2 %v987_v6  ;;  %v947_v43 = vor.u32 %v1100_v40, %v944_v41  ;;  %v1102_v46 = vld [vmem:[#allocation3 + $0x24] sm:$0xf]  ;;  %v952_v47 = vld [vmem:[#allocation3 + $0x28] sm:$0xf0]  ;;  %v951_v48 = vor.u32 %v1103_v45, %v950_v44  ;;  %v958_v50 = vld [vmem:[#allocation3 + $0x30] sm:$0xf] }
  0x4b   : > { %658 = vmatpush.bf16.msra.mxu3 %v1051_v10  ;;  %v955_v49 = vor.u32 %v1102_v46, %v952_v47  ;;  %v1105_v51 = vld [vmem:[#allocation3 + $0x34] sm:$0xf0]  ;;  %v1104_v52 = vld [vmem:[#allocation3 + $0x34] sm:$0xf]  ;;  %v960_v53 = vld [vmem:[#allocation3 + $0x38] sm:$0xf0] }
  0x4c   : > { %572 = vmatpush.bf16.msra.mxu0 %v975_v16  ;;  %v959_v54 = vor.u32 %v1105_v51, %v958_v50  ;;  %v963_v55 = vor.u32 %v1104_v52, %v960_v53  ;;  %s254_s10 = scalar_lea.vmem [#allocation8], %s930_s7  ;;  %s931_s11 = sshll.u32 %s1557_s9, 6 }
  0x4d   : > { %601 = vmatpush.bf16.msra.mxu1 %v1039_v17  ;;  %v733_v58 = vld [vmem:[%s254_s10] sm:$0x3]  ;;  %s1638_s20 = scalar_lea.vmem [#allocation9], %s931_s11  ;;  %s1138_s27 = sshll.u32 %s1391_s15, 3 }
  0x4e   : > { %630 = vmatpush.bf16.msra.mxu2 %v979_v18  ;;  %v1631_v60 = vperm.slane %v733_v58, 0  ;;  %v1633_v62 = vperm.slane %v733_v58, 1  ;;  %s786_s30 = scalar_lea.hbm %s1703_s3, %s1138_s27  ;;  %s787_s4 = sshll.u32 %s1638_s20, 4  ;;  %s788_s4 = int_to_ptr.vmem [resolvable:$true] %s787_s4 }
  0x4f   : > { %659 = vmatpush.bf16.msra.mxu3 %v1043_v22  ;;  %s789_s5 = sshll.u32 %s786_s30, 4  ;;  %s772_s15 = scalar_lea.sflag [#allocation5], %s1557_s9  ;;  %s790_s5 = int_to_ptr.hbm [resolvable:$true] %s789_s5 }
  0x50   : > { %573 = vmatpush.bf16.msra.mxu0 %v967_v28  ;;  %s1327_s8 = sshra.s32 %s790_s5, 4  ;;  %s1333_s23 = scalar_lea.hbm %s1703_s3, 192  ;;  %s1328_s8 = int_to_ptr.hbm [resolvable:$true] %s1327_s8 }
  0x51   : > { %602 = vmatpush.bf16.msra.mxu1 %v1031_v31  ;;  %s1329_s19 = scalar_lea.hbm %s1328_s8, 64  ;;  %p1334_p8 = scmp.lt.s32.totalorder %s1328_s8, %s1703_s3 }
  0x52   : > { %631 = vmatpush.bf16.msra.mxu2 %v971_v32  ;;  %p1330_p5 = scmp.ne.s32.totalorder %s1328_s8, %s1329_s19  ;;  %p1335_p9 = scmp.lt.s32.totalorder %s1333_s23, %s1329_s19 }
  0x53   : > { %660 = vmatpush.bf16.msra.mxu3 %v1035_v35  ;;  %574 = vmatmul.bf16.vlgmr.msra.gmra.mxu0 %v935_v36 }
  0x54   : > { %603 = vmatmul.bf16.vlgmr.msra.gmra.mxu1 %v939_v37  ;;  %p1331_p6 = pnand %p1330_p5, %p1517_p13  ;;  %p1336_p10 = por %p1335_p9, %p1334_p8 }
  0x55   : > { %632 = vmatmul.bf16.vlgmr.msra.gmra.mxu2 %v935_v36 }
  0x56   : > { %661 = vmatmul.bf16.vlgmr.msra.gmra.mxu3 %v939_v37  ;;  %p1332_p7 = pneg %p1331_p6 }
  0x58   : > { %p1337_p11 = pnand %p1336_p10, %p1332_p7 }
  0x63   : > { %579 = vmatmul.bf16.gmra.mxu0 %v943_v42 }
  0x64   : > { %608 = vmatmul.bf16.gmra.mxu1 %v947_v43 }
  0x65   : > { %637 = vmatmul.bf16.gmra.mxu2 %v943_v42 }
  0x66   : > { %666 = vmatmul.bf16.gmra.mxu3 %v947_v43 }
  0x73   : > { %584 = vmatmul.bf16.gmra.mxu0 %v951_v48 }
  0x74   : > { %613 = vmatmul.bf16.gmra.mxu1 %v955_v49 }
  0x75   : > { %642 = vmatmul.bf16.gmra.mxu2 %v951_v48 }
  0x76   : > { %671 = vmatmul.bf16.gmra.mxu3 %v955_v49 }
  0x83   : > { %589 = vmatmul.bf16.gmra.mxu0 %v959_v54 }
  0x84   : > { %618 = vmatmul.bf16.gmra.mxu1 %v963_v55 }
  0x85   : > { %647 = vmatmul.bf16.gmra.mxu2 %v959_v54 }
  0x86   : > { %676 = vmatmul.bf16.gmra.mxu3 %v963_v55 }
  0xd0   : > { %v575_v56 = vpop.f32.mrf.mxu0 }
  0xd1   : > { %v604_v57 = vpop.f32.mrf.mxu1 }
  0xd2   : > { %v605_v59 = vadd.f32 %v604_v57, %v575_v56 }
  0xd4   : > { %v739_v1 = vadd.f32 %v1631_v60, %v605_v59 }
  0xd8   : > { %v633_v61 = vpop.f32.mrf.mxu2  ;;  %v577_v0 = vpop.f32.mrf.mxu0 }
  0xd9   : > { %v662_v63 = vpop.f32.mrf.mxu3  ;;  %v606_v3 = vpop.f32.mrf.mxu1 }
  0xda   : > { %v663_v2 = vadd.f32 %v662_v63, %v633_v61  ;;  %v607_v6 = vadd.f32 %v606_v3, %v577_v0 }
  0xdc   : > { %v740_v4 = vadd.f32 %v1633_v62, %v663_v2  ;;  %v741_v12 = vadd.f32 %v1631_v60, %v607_v6 }
  0xde   : > { %v755_v5 = vpack.c.bf16 %v740_v4, %v739_v1 }
  0xe0   : > { %763 = vst [vmem:[%s1638_s20] sm:$0xff] %v755_v5  ;;  %v635_v7 = vpop.f32.mrf.mxu2  ;;  %v580_v9 = vpop.f32.mrf.mxu0 }
  0xe1   : > { %v664_v8 = vpop.f32.mrf.mxu3  ;;  %v609_v11 = vpop.f32.mrf.mxu1 }
  0xe2   : > { %v665_v10 = vadd.f32 %v664_v8, %v635_v7  ;;  %v610_v15 = vadd.f32 %v609_v11, %v580_v9 }
  0xe4   : > { %v742_v13 = vadd.f32 %v1633_v62, %v665_v10  ;;  %v743_v19 = vadd.f32 %v1631_v60, %v610_v15 }
  0xe6   : > { %v756_v14 = vpack.c.bf16 %v742_v13, %v741_v12 }
  0xe8   : > { %764 = vst [vmem:[%s1638_s20 + $0x8] sm:$0xff] %v756_v14  ;;  %v638_v16 = vpop.f32.mrf.mxu2  ;;  %v582_v18 = vpop.f32.mrf.mxu0 }
  0xe9   : > { %v667_v17 = vpop.f32.mrf.mxu3  ;;  %v611_v21 = vpop.f32.mrf.mxu1 }
  0xea   : > { %v668_v20 = vadd.f32 %v667_v17, %v638_v16  ;;  %v612_v24 = vadd.f32 %v611_v21, %v582_v18 }
  0xec   : > { %v744_v22 = vadd.f32 %v1633_v62, %v668_v20  ;;  %v745_v30 = vadd.f32 %v1631_v60, %v612_v24 }
  0xee   : > { %v757_v23 = vpack.c.bf16 %v744_v22, %v743_v19 }
  0xf0   : > { %765 = vst [vmem:[%s1638_s20 + $0x10] sm:$0xff] %v757_v23  ;;  %v640_v25 = vpop.f32.mrf.mxu2  ;;  %v585_v27 = vpop.f32.mrf.mxu0 }
  0xf1   : > { %v669_v26 = vpop.f32.mrf.mxu3  ;;  %v614_v29 = vpop.f32.mrf.mxu1 }
  0xf2   : > { %v670_v28 = vadd.f32 %v669_v26, %v640_v25  ;;  %v615_v33 = vadd.f32 %v614_v29, %v585_v27 }
  0xf4   : > { %v746_v31 = vadd.f32 %v1633_v62, %v670_v28  ;;  %v747_v37 = vadd.f32 %v1631_v60, %v615_v33 }
  0xf6   : > { %v758_v32 = vpack.c.bf16 %v746_v31, %v745_v30 }
  0xf8   : > { %766 = vst [vmem:[%s1638_s20 + $0x18] sm:$0xff] %v758_v32  ;;  %v643_v34 = vpop.f32.mrf.mxu2  ;;  %v587_v36 = vpop.f32.mrf.mxu0 }
  0xf9   : > { %v672_v35 = vpop.f32.mrf.mxu3  ;;  %v616_v39 = vpop.f32.mrf.mxu1 }
  0xfa   : > { %v673_v38 = vadd.f32 %v672_v35, %v643_v34  ;;  %v617_v42 = vadd.f32 %v616_v39, %v587_v36 }
  0xfc   : > { %v748_v40 = vadd.f32 %v1633_v62, %v673_v38  ;;  %v749_v48 = vadd.f32 %v1631_v60, %v617_v42 }
  0xfe   : > { %v759_v41 = vpack.c.bf16 %v748_v40, %v747_v37 }
 0x100   : > { %767 = vst [vmem:[%s1638_s20 + $0x20] sm:$0xff] %v759_v41  ;;  %v645_v43 = vpop.f32.mrf.mxu2  ;;  %v590_v46 = vpop.f32.mrf.mxu0 }
 0x101   : > { %v674_v44 = vpop.f32.mrf.mxu3  ;;  %v619_v47 = vpop.f32.mrf.mxu1 }
 0x102   : > { %v675_v45 = vadd.f32 %v674_v44, %v645_v43  ;;  %v620_v51 = vadd.f32 %v619_v47, %v590_v46 }
 0x104   : > { %v750_v49 = vadd.f32 %v1633_v62, %v675_v45  ;;  %v751_v54 = vadd.f32 %v1631_v60, %v620_v51 }
 0x106   : > { %v760_v50 = vpack.c.bf16 %v750_v49, %v749_v48 }
 0x108   : > { %768 = vst [vmem:[%s1638_s20 + $0x28] sm:$0xff] %v760_v50  ;;  %v648_v52 = vpop.f32.mrf.mxu2  ;;  %v592_v57 = vpop.f32.mrf.mxu0 }
 0x109   : > { %v677_v53 = vpop.f32.mrf.mxu3  ;;  %v621_v58 = vpop.f32.mrf.mxu1 }
 0x10a   : > { %v678_v55 = vadd.f32 %v677_v53, %v648_v52  ;;  %v622_v61 = vadd.f32 %v621_v58, %v592_v57 }
 0x10c   : > { %v752_v56 = vadd.f32 %v1633_v62, %v678_v55  ;;  %v753_v2 = vadd.f32 %v1631_v60, %v622_v61 }
 0x10e   : > { %v761_v59 = vpack.c.bf16 %v752_v56, %v751_v54 }
 0x110   : > { %769 = vst [vmem:[%s1638_s20 + $0x30] sm:$0xff] %v761_v59  ;;  %v650_v63 = vpop.f32.mrf.mxu2 }
 0x111   : > { %v679_v0 = vpop.f32.mrf.mxu3 }
 0x112   : > { %v680_v1 = vadd.f32 %v679_v0, %v650_v63 }
 0x114   : > { %v754_v3 = vadd.f32 %v1633_v62, %v680_v1 }
 0x116   : > { %v762_v4 = vpack.c.bf16 %v754_v3, %v753_v2 }
 0x118   : > { %770 = vst [vmem:[%s1638_s20 + $0x38] sm:$0xff] %v762_v4 }
 0x119   : > { %1340 = shalt.err (!%p1337_p11)
}
 0x11a   : > { %s1405_s9 = smov 128   ;;  %s1406_s6 = smov 384  }
 0x11b   : > { %s1407_s7 = smov 8  }
 0x11c   : > { %1147 = dma.vmem_to_hbm [thread:$0]  (%p1517_p13), %s788_s4, 1024, %s790_s5, %s772_s15, %s1405_s9, %s1406_s6, %s1407_s7  }
 0x11d PF: > { %p1167_p12 = scmp.ge.s32.totalorder %s1399_s17, 2  ;;  %s804_s10 = sand.u32 1, %s1379_s12  }
 0x11e   : > { %s805_s11 = scalar_lea.sflag [#allocation5], %s804_s10 }
 0x11f   : > { %p1161_p2 = pnand %p1167_p12, %p1521_p0 }
 0x121   : > { %p1162_p3 = pneg %p1161_p2 }
 0x123   : > { %1374 = dma.done.wait (%p1162_p3), %s805_s11, 1024  }
 0x124   : > { %1376 = vsyncadd (%p1162_p3), %s805_s11, 4294966272  ;;  %s20_s17 = sadd.s32 1, %s1399_s17   ;;  %s1718_s12 = smov %s1383_s13 }
 0x125   : > { %p17_p1 = scmp.ge.s32.totalorder %s20_s17, 5   ;;  %s1719_s13 = smov %s1387_s14 }
 0x126   : > { %s1720_s14 = smov %s1478_s24  ;;  %s1721_s15 = smov %s1395_s16 }
 0x127   : > { %s1722_s16 = smov %s1724_s18  ;;  %19 = sbr.rel (!%p17_p1) target bundleno = 10 (0xa), region = 102 }
 0x12c   :  { %811 = vsyncpa [#allocation4], 1 }
 0x12d   :  { %813 = vsyncpa [#allocation4 + $0x1], 1 }
 0x12e   :  { %814 = vsyncpa [#allocation7], 1 }
 0x12f   :  { %816 = vsyncpa [#allocation7 + $0x1], 1 }
 0x130   :  { %817 = vsyncpa [#allocation5], 1 }
 0x131   :  { %819 = vsyncpa [#allocation5 + $0x1], 1 }

</bundles_post_ra>
